<compile_context>
chip_gen: v5e
topology: v5e:2x2
jax: 0.10.0
libtpu: 0.0.40
codegen_flags: <defaults>
</compile_context>

<pallas_src>
import math
import functools

import jax
import jax.numpy as jnp
from jax.experimental import pallas as pl
from jax.experimental.pallas import tpu as pltpu


def _vmem_budget_bytes():
    """Conservative per-grid-step VMEM budget (bytes)."""
    try:
        cap = getattr(pltpu.get_tpu_info(), "vmem_capacity_bytes", None)
        if cap:
            return int(cap) // 4        # headroom: weights, double-buffering, scratch
    except Exception:
        pass
    return 16 * 1024 * 1024             # v5e scoped-VMEM default; safe everywhere


def _pick_block_batch(B, S, H, nh, hd):
    """Largest divisor of B whose per-step working set fits the VMEM budget."""
    per_b = 4 * (3 * S * H              # q, k, v input blocks
                 + 3 * nh * S * H       # head-broadcast activations
                 + 3 * nh * S * hd      # Qh, Kh, Vh
                 + 2 * nh * S * S       # scores + probabilities
                 + nh * S * hd          # attention output
                 + nh * S * H           # per-head merge partials
                 + 2 * S * H)           # output block (double buffered)
    per_b *= 3                          # slack: pipelining + layout padding
    bb = max(1, min(B, _vmem_budget_bytes() // max(per_b, 1)))
    while B % bb:                       # grid * bb must equal B exactly
        bb -= 1
    return bb


def _mhatt_kernel(bb, S, H, nh, hd,
                  q_ref, k_ref, v_ref, mask_ref,
                  wq_ref, bq_ref, wk_ref, bk_ref, wv_ref, bv_ref,
                  wm_ref, bm_ref, out_ref):
    """One grid step processes `bb` batch elements.

    q/k/v_ref    : (bb, S, H)   f32 activations
    mask_ref     : (bb, 1, S)   f32, > 0.5 means masked (torch key-padding mask)
    w{q,k,v}_ref : (nh, H, hd)  bf16 head-major projection weights
                   (1/sqrt(hd) already folded into wq)
    b{q,k,v}_ref : (nh, 1, hd)  f32 biases (1/sqrt(hd) folded into bq)
    wm_ref       : (nh, hd, H)  bf16 merge weight, rows grouped per head
    bm_ref       : (1, H)       f32
    out_ref      : (bb, S, H)   f32
    """
    BH = bb * nh
    f32 = jnp.float32

    def project(xr, wr, br):
        # bf16 MXU operands, f32 accumulation.  Only leading-dim broadcasts /
        # reshapes (vreg replication + index arithmetic) -> no lane relayout.
        x = xr[...].astype(jnp.bfloat16)                                   # (bb,S,H)
        xb = jnp.broadcast_to(x[:, None], (bb, nh, S, H)).reshape(BH, S, H)
        w = jnp.broadcast_to(wr[...][None], (bb, nh, H, hd)).reshape(BH, H, hd)
        y = jnp.einsum('bsH,bHd->bsd', xb, w, preferred_element_type=f32)
        b = jnp.broadcast_to(br[...][None], (bb, nh, 1, hd)).reshape(BH, 1, hd)
        return y + b                                                       # (BH,S,hd) f32

    Qh = project(q_ref, wq_ref, bq_ref)      # already scaled by 1/sqrt(hd)
    Kh = project(k_ref, wk_ref, bk_ref)
    Vh = project(v_ref, wv_ref, bv_ref)

    # scores: batched dot over (batch*head); contract head dim directly.
    s = jnp.einsum('bqd,bkd->bqk',
                   Qh.astype(jnp.bfloat16), Kh.astype(jnp.bfloat16),
                   preferred_element_type=f32)                             # (BH,S,S)

    # torch masked_fill(mask, -1e9): set (not add) where mask is True.
    m = jnp.broadcast_to(mask_ref[...][:, None], (bb, nh, 1, S)).reshape(BH, 1, S)
    s = jnp.where(m > 0.5, f32(-1e9), s)

    # softmax in f32 (exact divide keeps parity with the torch reference).
    s = s - jnp.max(s, axis=-1, keepdims=True)
    p = jnp.exp(s)
    p = p / jnp.sum(p, axis=-1, keepdims=True)

    attn = jnp.einsum('bqk,bkd->bqd',
                      p.astype(jnp.bfloat16), Vh.astype(jnp.bfloat16),
                      preferred_element_type=f32)                          # (BH,S,hd)

    # merge: atted @ Wm == sum_h attn_h @ Wm[h].  Per-head partials on the
    # MXU; head-sum is nh-1 cheap vector adds.  wm is never bb-tiled in HBM —
    # the per-batch replication below is vreg-level only.
    wm = jnp.broadcast_to(wm_ref[...][None], (bb, nh, hd, H)).reshape(BH, hd, H)
    tmp = jnp.einsum('bqd,bdH->bqH', attn.astype(jnp.bfloat16), wm,
                     preferred_element_type=f32)                           # (BH,S,H)
    out = tmp.reshape(bb, nh, S, H).sum(axis=1) + bm_ref[...]              # (bb,S,H)

    # NOTE: H=32 < 128 lanes -> masked store at toy sizes; at production
    # hidden sizes (H a multiple of 128) this store is lane-dense as-is.
    out_ref[...] = out.astype(out_ref.dtype)


def mhatt_pallas(v, k, q, mask_bool, params, n_heads):
    """Pallas MHAtt.forward. v, k, q: (B,S,H) f32; mask_bool: (B,1,1,S) bool."""
    B, S, H = q.shape
    assert H % n_heads == 0
    nh = n_heads
    hd = H // nh
    bb = _pick_block_batch(B, S, H, nh, hd)
    grid = (B // bb,)

    scale = 1.0 / math.sqrt(hd)

    def head_major(w):                  # (H, H) -> (nh, H, hd)
        return w.reshape(H, nh, hd).transpose(1, 0, 2)

    def head_bias(b):                   # (1, H) -> (nh, 1, hd)
        return b.reshape(nh, hd)[:, None, :]

    # One-time wrapper-side weight re-layout (tiny; pure XLA, outside kernel).
    wq = head_major(params["wq"] * scale).astype(jnp.bfloat16)
    wk = head_major(params["wk"]).astype(jnp.bfloat16)
    wv = head_major(params["wv"]).astype(jnp.bfloat16)
    bq = head_bias(params["bq"] * scale)
    bk = head_bias(params["bk"])
    bv = head_bias(params["bv"])
    wm = params["wm"].reshape(nh, hd, H).astype(jnp.bfloat16)   # rows grouped per head
    bm = params["bm"]                                           # (1, H) f32

    # Tiny mask: (B,1,1,S) bool -> (B,1,S) f32 (~S floats per batch, not S^2).
    mask_f = mask_bool.astype(jnp.float32).reshape(B, 1, S)

    kernel = functools.partial(_mhatt_kernel, bb, S, H, nh, hd)

    x_spec = pl.BlockSpec((bb, S, H), lambda i: (i, 0, 0))
    m_spec = pl.BlockSpec((bb, 1, S), lambda i: (i, 0, 0))
    w_spec = pl.BlockSpec((nh, H, hd), lambda i: (0, 0, 0))
    b_spec = pl.BlockSpec((nh, 1, hd), lambda i: (0, 0, 0))
    wm_spec = pl.BlockSpec((nh, hd, H), lambda i: (0, 0, 0))
    bm_spec = pl.BlockSpec((1, H), lambda i: (0, 0))

    # NOTE: weights/biases use constant index_maps; once tiles grow, also
    # single-buffer them (pipeline_mode=pl.Buffered(1)) and raise
    # vmem_limit_bytes in CompilerParams.  Not needed at these sizes.
    out = pl.pallas_call(
        kernel,
        out_shape=jax.ShapeDtypeStruct((B, S, H), jnp.float32),
        grid=grid,
        in_specs=[x_spec, x_spec, x_spec, m_spec,
                  w_spec, b_spec, w_spec, b_spec, w_spec, b_spec,
                  wm_spec, bm_spec],
        out_specs=pl.BlockSpec((bb, S, H), lambda i: (i, 0, 0)),
        compiler_params=pltpu.CompilerParams(
            dimension_semantics=("parallel",)),
    )(q, k, v, mask_f, wq, bq, wk, bk, wv, bv, wm, bm)

    return out


def mhatt_reference(v, k, q, mask_bool, params, n_heads):
    """Pure-JAX f32 reference mirroring the torch module exactly."""
    B, S, H = q.shape
    hd = H // n_heads
    Q = q @ params["wq"] + params["bq"]
    K = k @ params["wk"] + params["bk"]
    V = v @ params["wv"] + params["bv"]
    Qh = Q.reshape(B, S, n_heads, hd).transpose(0, 2, 1, 3)
    Kh = K.reshape(B, S, n_heads, hd).transpose(0, 2, 1, 3)
    Vh = V.reshape(B, S, n_heads, hd).transpose(0, 2, 1, 3)
    scores = jnp.einsum("bhqd,bhkd->bhqk", Qh, Kh) / math.sqrt(hd)
    scores = jnp.where(mask_bool, jnp.float32(-1e9), scores)  # (B,1,1,S) broadcast
    p = jax.nn.softmax(scores, axis=-1)
    o = jnp.einsum("bhqk,bhkd->bhqd", p, Vh)
    o = o.transpose(0, 2, 1, 3).reshape(B, S, H)
    return o @ params["wm"] + params["bm"]


if __name__ == "__main__":
    # opt.fusion_hidden_size = 32, opt.fusion_multi_head = 4
    B, S, H, NH = 2, 8, 32, 4

    key = jax.random.PRNGKey(0)
    ks = jax.random.split(key, 12)

    def init_w(kk):
        return jax.random.normal(kk, (H, H), jnp.float32) * 0.05

    def init_b(kk):
        return jax.random.normal(kk, (1, H), jnp.float32) * 0.05

    params = {
        "wq": init_w(ks[0]), "bq": init_b(ks[1]),
        "wk": init_w(ks[2]), "bk": init_b(ks[3]),
        "wv": init_w(ks[4]), "bv": init_b(ks[5]),
        "wm": init_w(ks[6]), "bm": init_b(ks[7]),
    }

    q = jax.random.normal(ks[8], (B, S, H), jnp.float32)
    k = jax.random.normal(ks[9], (B, S, H), jnp.float32)
    v = jax.random.normal(ks[10], (B, S, H), jnp.float32)
    # torch-style key-padding mask: True => masked (fill with -1e9)
    mask = jax.random.bernoulli(ks[11], p=0.25, shape=(B, 1, 1, S))

    out = mhatt_pallas(v, k, q, mask, params, NH)
    out = jax.block_until_ready(out)

    ref = mhatt_reference(v, k, q, mask, params, NH)
    assert out.shape == (B, S, H)
    # Tolerance accounts for bf16 MXU operands (softmax itself stays f32 with
    # an exact divide); observed error is ~1e-3 at these magnitudes.
    err = jnp.max(jnp.abs(out - ref))
    assert jnp.allclose(out, ref, atol=1e-2, rtol=1e-2), \
        f"mismatch vs reference (max abs err {err})"

    print("KERNEL_OK")
</pallas_src>

<mosaic_0001>
module attributes {stable_mosaic.version = 11 : i64} {
  func.func @_mhatt_kernel(%arg0: i32, %arg1: memref<2x8x32xf32, #tpu.memory_space<vmem>>, %arg2: memref<2x8x32xf32, #tpu.memory_space<vmem>>, %arg3: memref<2x8x32xf32, #tpu.memory_space<vmem>>, %arg4: memref<2x1x8xf32, #tpu.memory_space<vmem>>, %arg5: memref<4x32x8xbf16, #tpu.memory_space<vmem>>, %arg6: memref<4x1x8xf32, #tpu.memory_space<vmem>>, %arg7: memref<4x32x8xbf16, #tpu.memory_space<vmem>>, %arg8: memref<4x1x8xf32, #tpu.memory_space<vmem>>, %arg9: memref<4x32x8xbf16, #tpu.memory_space<vmem>>, %arg10: memref<4x1x8xf32, #tpu.memory_space<vmem>>, %arg11: memref<4x8x32xbf16, #tpu.memory_space<vmem>>, %arg12: memref<1x32xf32, #tpu.memory_space<vmem>>, %arg13: memref<2x8x32xf32, #tpu.memory_space<vmem>>) attributes {dimension_semantics = [#tpu.dimension_semantics<parallel>], iteration_bounds = array<i64: 1>, scalar_prefetch = 0 : i64, scratch_operands = 0 : i64, tpu.core_type = #tpu.core_type<tc>, window_params = [{transform_indices = @transform_0, window_bounds = array<i64: 2, 8, 32>}, {transform_indices = @transform_1, window_bounds = array<i64: 2, 8, 32>}, {transform_indices = @transform_2, window_bounds = array<i64: 2, 8, 32>}, {transform_indices = @transform_3, window_bounds = array<i64: 2, 1, 8>}, {pipeline_mode = #tpu.pipeline_mode<synchronous>, transform_indices = @transform_4, window_bounds = array<i64: 4, 32, 8>}, {pipeline_mode = #tpu.pipeline_mode<synchronous>, transform_indices = @transform_5, window_bounds = array<i64: 4, 1, 8>}, {pipeline_mode = #tpu.pipeline_mode<synchronous>, transform_indices = @transform_6, window_bounds = array<i64: 4, 32, 8>}, {pipeline_mode = #tpu.pipeline_mode<synchronous>, transform_indices = @transform_7, window_bounds = array<i64: 4, 1, 8>}, {pipeline_mode = #tpu.pipeline_mode<synchronous>, transform_indices = @transform_8, window_bounds = array<i64: 4, 32, 8>}, {pipeline_mode = #tpu.pipeline_mode<synchronous>, transform_indices = @transform_9, window_bounds = array<i64: 4, 1, 8>}, {pipeline_mode = #tpu.pipeline_mode<synchronous>, transform_indices = @transform_10, window_bounds = array<i64: 4, 8, 32>}, {pipeline_mode = #tpu.pipeline_mode<synchronous>, transform_indices = @transform_11, window_bounds = array<i64: 1, 32>}, {transform_indices = @transform_12, window_bounds = array<i64: 2, 8, 32>}]} {
    %c0 = arith.constant 0 : index
    %c0_0 = arith.constant 0 : index
    %c0_1 = arith.constant 0 : index
    %0 = vector.load %arg1[%c0, %c0_0, %c0_1] : memref<2x8x32xf32, #tpu.memory_space<vmem>>, vector<2x8x32xf32>
    %1 = arith.truncf %0 : vector<2x8x32xf32> to vector<2x8x32xbf16>
    %2 = vector.shape_cast %1 : vector<2x8x32xbf16> to vector<2x1x8x32xbf16>
    %3 = vector.shape_cast %2 : vector<2x1x8x32xbf16> to vector<2x1x8x32xbf16>
    %4 = vector.broadcast %3 : vector<2x1x8x32xbf16> to vector<2x4x8x32xbf16>
    %5 = vector.shape_cast %4 : vector<2x4x8x32xbf16> to vector<8x8x32xbf16>
    %c0_2 = arith.constant 0 : index
    %c0_3 = arith.constant 0 : index
    %c0_4 = arith.constant 0 : index
    %6 = vector.load %arg5[%c0_2, %c0_3, %c0_4] : memref<4x32x8xbf16, #tpu.memory_space<vmem>>, vector<4x32x8xbf16>
    %7 = vector.shape_cast %6 : vector<4x32x8xbf16> to vector<1x4x32x8xbf16>
    %8 = vector.shape_cast %7 : vector<1x4x32x8xbf16> to vector<1x4x32x8xbf16>
    %9 = vector.broadcast %8 : vector<1x4x32x8xbf16> to vector<2x4x32x8xbf16>
    %10 = vector.shape_cast %9 : vector<2x4x32x8xbf16> to vector<8x32x8xbf16>
    "tpu.trace_start"() <{level = 10 : i32, message = "bsH,bHd->bsd"}> : () -> ()
    %cst = arith.constant dense<0.000000e+00> : vector<8x8x8xf32>
    %11 = tpu.matmul %5, %10, %cst {dimension_numbers = #tpu.dot_dimension_numbers<[2], [1], [1], [2], [0, 0, 0, 1, 1, 2], [0], [0]>} : vector<8x8x32xbf16>, vector<8x32x8xbf16>, vector<8x8x8xf32> -> vector<8x8x8xf32>
    "tpu.trace_stop"() : () -> ()
    %c0_5 = arith.constant 0 : index
    %c0_6 = arith.constant 0 : index
    %c0_7 = arith.constant 0 : index
    %12 = vector.load %arg6[%c0_5, %c0_6, %c0_7] : memref<4x1x8xf32, #tpu.memory_space<vmem>>, vector<4x1x8xf32>
    %13 = vector.shape_cast %12 : vector<4x1x8xf32> to vector<1x4x1x8xf32>
    %14 = vector.shape_cast %13 : vector<1x4x1x8xf32> to vector<1x4x1x8xf32>
    %15 = vector.broadcast %14 : vector<1x4x1x8xf32> to vector<2x4x1x8xf32>
    %16 = vector.shape_cast %15 : vector<2x4x1x8xf32> to vector<8x1x8xf32>
    %17 = vector.broadcast %16 : vector<8x1x8xf32> to vector<8x8x8xf32>
    %18 = arith.addf %11, %17 : vector<8x8x8xf32>
    %c0_8 = arith.constant 0 : index
    %c0_9 = arith.constant 0 : index
    %c0_10 = arith.constant 0 : index
    %19 = vector.load %arg2[%c0_8, %c0_9, %c0_10] : memref<2x8x32xf32, #tpu.memory_space<vmem>>, vector<2x8x32xf32>
    %20 = arith.truncf %19 : vector<2x8x32xf32> to vector<2x8x32xbf16>
    %21 = vector.shape_cast %20 : vector<2x8x32xbf16> to vector<2x1x8x32xbf16>
    %22 = vector.shape_cast %21 : vector<2x1x8x32xbf16> to vector<2x1x8x32xbf16>
    %23 = vector.broadcast %22 : vector<2x1x8x32xbf16> to vector<2x4x8x32xbf16>
    %24 = vector.shape_cast %23 : vector<2x4x8x32xbf16> to vector<8x8x32xbf16>
    %c0_11 = arith.constant 0 : index
    %c0_12 = arith.constant 0 : index
    %c0_13 = arith.constant 0 : index
    %25 = vector.load %arg7[%c0_11, %c0_12, %c0_13] : memref<4x32x8xbf16, #tpu.memory_space<vmem>>, vector<4x32x8xbf16>
    %26 = vector.shape_cast %25 : vector<4x32x8xbf16> to vector<1x4x32x8xbf16>
    %27 = vector.shape_cast %26 : vector<1x4x32x8xbf16> to vector<1x4x32x8xbf16>
    %28 = vector.broadcast %27 : vector<1x4x32x8xbf16> to vector<2x4x32x8xbf16>
    %29 = vector.shape_cast %28 : vector<2x4x32x8xbf16> to vector<8x32x8xbf16>
    "tpu.trace_start"() <{level = 10 : i32, message = "bsH,bHd->bsd"}> : () -> ()
    %cst_14 = arith.constant dense<0.000000e+00> : vector<8x8x8xf32>
    %30 = tpu.matmul %24, %29, %cst_14 {dimension_numbers = #tpu.dot_dimension_numbers<[2], [1], [1], [2], [0, 0, 0, 1, 1, 2], [0], [0]>} : vector<8x8x32xbf16>, vector<8x32x8xbf16>, vector<8x8x8xf32> -> vector<8x8x8xf32>
    "tpu.trace_stop"() : () -> ()
    %c0_15 = arith.constant 0 : index
    %c0_16 = arith.constant 0 : index
    %c0_17 = arith.constant 0 : index
    %31 = vector.load %arg8[%c0_15, %c0_16, %c0_17] : memref<4x1x8xf32, #tpu.memory_space<vmem>>, vector<4x1x8xf32>
    %32 = vector.shape_cast %31 : vector<4x1x8xf32> to vector<1x4x1x8xf32>
    %33 = vector.shape_cast %32 : vector<1x4x1x8xf32> to vector<1x4x1x8xf32>
    %34 = vector.broadcast %33 : vector<1x4x1x8xf32> to vector<2x4x1x8xf32>
    %35 = vector.shape_cast %34 : vector<2x4x1x8xf32> to vector<8x1x8xf32>
    %36 = vector.broadcast %35 : vector<8x1x8xf32> to vector<8x8x8xf32>
    %37 = arith.addf %30, %36 : vector<8x8x8xf32>
    %c0_18 = arith.constant 0 : index
    %c0_19 = arith.constant 0 : index
    %c0_20 = arith.constant 0 : index
    %38 = vector.load %arg3[%c0_18, %c0_19, %c0_20] : memref<2x8x32xf32, #tpu.memory_space<vmem>>, vector<2x8x32xf32>
    %39 = arith.truncf %38 : vector<2x8x32xf32> to vector<2x8x32xbf16>
    %40 = vector.shape_cast %39 : vector<2x8x32xbf16> to vector<2x1x8x32xbf16>
    %41 = vector.shape_cast %40 : vector<2x1x8x32xbf16> to vector<2x1x8x32xbf16>
    %42 = vector.broadcast %41 : vector<2x1x8x32xbf16> to vector<2x4x8x32xbf16>
    %43 = vector.shape_cast %42 : vector<2x4x8x32xbf16> to vector<8x8x32xbf16>
    %c0_21 = arith.constant 0 : index
    %c0_22 = arith.constant 0 : index
    %c0_23 = arith.constant 0 : index
    %44 = vector.load %arg9[%c0_21, %c0_22, %c0_23] : memref<4x32x8xbf16, #tpu.memory_space<vmem>>, vector<4x32x8xbf16>
    %45 = vector.shape_cast %44 : vector<4x32x8xbf16> to vector<1x4x32x8xbf16>
    %46 = vector.shape_cast %45 : vector<1x4x32x8xbf16> to vector<1x4x32x8xbf16>
    %47 = vector.broadcast %46 : vector<1x4x32x8xbf16> to vector<2x4x32x8xbf16>
    %48 = vector.shape_cast %47 : vector<2x4x32x8xbf16> to vector<8x32x8xbf16>
    "tpu.trace_start"() <{level = 10 : i32, message = "bsH,bHd->bsd"}> : () -> ()
    %cst_24 = arith.constant dense<0.000000e+00> : vector<8x8x8xf32>
    %49 = tpu.matmul %43, %48, %cst_24 {dimension_numbers = #tpu.dot_dimension_numbers<[2], [1], [1], [2], [0, 0, 0, 1, 1, 2], [0], [0]>} : vector<8x8x32xbf16>, vector<8x32x8xbf16>, vector<8x8x8xf32> -> vector<8x8x8xf32>
    "tpu.trace_stop"() : () -> ()
    %c0_25 = arith.constant 0 : index
    %c0_26 = arith.constant 0 : index
    %c0_27 = arith.constant 0 : index
    %50 = vector.load %arg10[%c0_25, %c0_26, %c0_27] : memref<4x1x8xf32, #tpu.memory_space<vmem>>, vector<4x1x8xf32>
    %51 = vector.shape_cast %50 : vector<4x1x8xf32> to vector<1x4x1x8xf32>
    %52 = vector.shape_cast %51 : vector<1x4x1x8xf32> to vector<1x4x1x8xf32>
    %53 = vector.broadcast %52 : vector<1x4x1x8xf32> to vector<2x4x1x8xf32>
    %54 = vector.shape_cast %53 : vector<2x4x1x8xf32> to vector<8x1x8xf32>
    %55 = vector.broadcast %54 : vector<8x1x8xf32> to vector<8x8x8xf32>
    %56 = arith.addf %49, %55 : vector<8x8x8xf32>
    %57 = arith.truncf %18 : vector<8x8x8xf32> to vector<8x8x8xbf16>
    %58 = arith.truncf %37 : vector<8x8x8xf32> to vector<8x8x8xbf16>
    "tpu.trace_start"() <{level = 10 : i32, message = "bqd,bkd->bqk"}> : () -> ()
    %cst_28 = arith.constant dense<0.000000e+00> : vector<8x8x8xf32>
    %59 = tpu.matmul %57, %58, %cst_28 {dimension_numbers = #tpu.dot_dimension_numbers<[2], [2], [1], [1], [0, 0, 0, 1, 1, 1], [0], [0]>} : vector<8x8x8xbf16>, vector<8x8x8xbf16>, vector<8x8x8xf32> -> vector<8x8x8xf32>
    "tpu.trace_stop"() : () -> ()
    %c0_29 = arith.constant 0 : index
    %c0_30 = arith.constant 0 : index
    %c0_31 = arith.constant 0 : index
    %60 = vector.load %arg4[%c0_29, %c0_30, %c0_31] : memref<2x1x8xf32, #tpu.memory_space<vmem>>, vector<2x1x8xf32>
    %61 = vector.shape_cast %60 : vector<2x1x8xf32> to vector<2x1x1x8xf32>
    %62 = vector.shape_cast %61 : vector<2x1x1x8xf32> to vector<2x1x1x8xf32>
    %63 = vector.broadcast %62 : vector<2x1x1x8xf32> to vector<2x4x1x8xf32>
    %64 = vector.shape_cast %63 : vector<2x4x1x8xf32> to vector<8x1x8xf32>
    %cst_32 = arith.constant 5.000000e-01 : f32
    %65 = vector.broadcast %cst_32 : f32 to vector<8x1x8xf32>
    %66 = arith.cmpf ogt, %64, %65 : vector<8x1x8xf32>
    %cst_33 = arith.constant -1.000000e+09 : f32
    %67 = vector.shape_cast %66 : vector<8x1x8xi1> to vector<8x1x8xi1>
    %68 = vector.broadcast %67 : vector<8x1x8xi1> to vector<8x8x8xi1>
    %69 = vector.broadcast %cst_33 : f32 to vector<8x8x8xf32>
    %70 = arith.select %68, %69, %59 : vector<8x8x8xi1>, vector<8x8x8xf32>
    %cst_34 = arith.constant dense<0xFF800000> : vector<8x8xf32>
    %71 = vector.multi_reduction <maximumf>, %70, %cst_34 [2] : vector<8x8x8xf32> to vector<8x8xf32>
    %72 = vector.shape_cast %71 : vector<8x8xf32> to vector<8x8x1xf32>
    %73 = vector.broadcast %72 : vector<8x8x1xf32> to vector<8x8x8xf32>
    %74 = arith.subf %70, %73 : vector<8x8x8xf32>
    %75 = math.exp %74 : vector<8x8x8xf32>
    %cst_35 = arith.constant dense<0.000000e+00> : vector<8x8xf32>
    %76 = vector.multi_reduction <add>, %75, %cst_35 [2] : vector<8x8x8xf32> to vector<8x8xf32>
    %77 = vector.shape_cast %76 : vector<8x8xf32> to vector<8x8x1xf32>
    %78 = vector.broadcast %77 : vector<8x8x1xf32> to vector<8x8x8xf32>
    %79 = arith.divf %75, %78 : vector<8x8x8xf32>
    %80 = arith.truncf %79 : vector<8x8x8xf32> to vector<8x8x8xbf16>
    %81 = arith.truncf %56 : vector<8x8x8xf32> to vector<8x8x8xbf16>
    "tpu.trace_start"() <{level = 10 : i32, message = "bqk,bkd->bqd"}> : () -> ()
    %cst_36 = arith.constant dense<0.000000e+00> : vector<8x8x8xf32>
    %82 = tpu.matmul %80, %81, %cst_36 {dimension_numbers = #tpu.dot_dimension_numbers<[2], [1], [1], [2], [0, 0, 0, 1, 1, 2], [0], [0]>} : vector<8x8x8xbf16>, vector<8x8x8xbf16>, vector<8x8x8xf32> -> vector<8x8x8xf32>
    "tpu.trace_stop"() : () -> ()
    %c0_37 = arith.constant 0 : index
    %c0_38 = arith.constant 0 : index
    %c0_39 = arith.constant 0 : index
    %83 = vector.load %arg11[%c0_37, %c0_38, %c0_39] : memref<4x8x32xbf16, #tpu.memory_space<vmem>>, vector<4x8x32xbf16>
    %84 = vector.shape_cast %83 : vector<4x8x32xbf16> to vector<1x4x8x32xbf16>
    %85 = vector.shape_cast %84 : vector<1x4x8x32xbf16> to vector<1x4x8x32xbf16>
    %86 = vector.broadcast %85 : vector<1x4x8x32xbf16> to vector<2x4x8x32xbf16>
    %87 = vector.shape_cast %86 : vector<2x4x8x32xbf16> to vector<8x8x32xbf16>
    %88 = arith.truncf %82 : vector<8x8x8xf32> to vector<8x8x8xbf16>
    "tpu.trace_start"() <{level = 10 : i32, message = "bqd,bdH->bqH"}> : () -> ()
    %cst_40 = arith.constant dense<0.000000e+00> : vector<8x8x32xf32>
    %89 = tpu.matmul %88, %87, %cst_40 {dimension_numbers = #tpu.dot_dimension_numbers<[2], [1], [1], [2], [0, 0, 0, 1, 1, 2], [0], [0]>} : vector<8x8x8xbf16>, vector<8x8x32xbf16>, vector<8x8x32xf32> -> vector<8x8x32xf32>
    "tpu.trace_stop"() : () -> ()
    %90 = vector.shape_cast %89 : vector<8x8x32xf32> to vector<2x4x8x32xf32>
    %cst_41 = arith.constant dense<0.000000e+00> : vector<2x8x32xf32>
    %91 = vector.multi_reduction <add>, %90, %cst_41 [1] : vector<2x4x8x32xf32> to vector<2x8x32xf32>
    %c0_42 = arith.constant 0 : index
    %c0_43 = arith.constant 0 : index
    %92 = vector.load %arg12[%c0_42, %c0_43] : memref<1x32xf32, #tpu.memory_space<vmem>>, vector<1x32xf32>
    %93 = vector.shape_cast %92 : vector<1x32xf32> to vector<1x1x32xf32>
    %94 = vector.broadcast %93 : vector<1x1x32xf32> to vector<2x8x32xf32>
    %95 = arith.addf %91, %94 : vector<2x8x32xf32>
    %c0_44 = arith.constant 0 : index
    %c0_45 = arith.constant 0 : index
    %c0_46 = arith.constant 0 : index
    %96 = vector.load %arg13[%c0_44, %c0_45, %c0_46] : memref<2x8x32xf32, #tpu.memory_space<vmem>>, vector<2x8x32xf32>
    tpu.vector_store %arg13[%c0_44, %c0_45, %c0_46], %95 {strides = array<i32>} : memref<2x8x32xf32, #tpu.memory_space<vmem>>, vector<2x8x32xf32>,
    return
  }
  func.func @transform_0(%arg0: i32) -> (i32, i32, i32) {
    %c0_i32 = arith.constant 0 : i32
    %c0_i32_0 = arith.constant 0 : i32
    %c0_i32_1 = arith.constant 0 : i32
    return %arg0, %c0_i32, %c0_i32_0 : i32, i32, i32
  }
  func.func @transform_1(%arg0: i32) -> (i32, i32, i32) {
    %c0_i32 = arith.constant 0 : i32
    %c0_i32_0 = arith.constant 0 : i32
    %c0_i32_1 = arith.constant 0 : i32
    return %arg0, %c0_i32, %c0_i32_0 : i32, i32, i32
  }
  func.func @transform_2(%arg0: i32) -> (i32, i32, i32) {
    %c0_i32 = arith.constant 0 : i32
    %c0_i32_0 = arith.constant 0 : i32
    %c0_i32_1 = arith.constant 0 : i32
    return %arg0, %c0_i32, %c0_i32_0 : i32, i32, i32
  }
  func.func @transform_3(%arg0: i32) -> (i32, i32, i32) {
    %c0_i32 = arith.constant 0 : i32
    %c0_i32_0 = arith.constant 0 : i32
    %c0_i32_1 = arith.constant 0 : i32
    return %arg0, %c0_i32, %c0_i32_0 : i32, i32, i32
  }
  func.func @transform_4(%arg0: i32) -> (i32, i32, i32) {
    %c0_i32 = arith.constant 0 : i32
    %c0_i32_0 = arith.constant 0 : i32
    %c0_i32_1 = arith.constant 0 : i32
    %c0_i32_2 = arith.constant 0 : i32
    return %c0_i32, %c0_i32_0, %c0_i32_1 : i32, i32, i32
  }
  func.func @transform_5(%arg0: i32) -> (i32, i32, i32) {
    %c0_i32 = arith.constant 0 : i32
    %c0_i32_0 = arith.constant 0 : i32
    %c0_i32_1 = arith.constant 0 : i32
    %c0_i32_2 = arith.constant 0 : i32
    return %c0_i32, %c0_i32_0, %c0_i32_1 : i32, i32, i32
  }
  func.func @transform_6(%arg0: i32) -> (i32, i32, i32) {
    %c0_i32 = arith.constant 0 : i32
    %c0_i32_0 = arith.constant 0 : i32
    %c0_i32_1 = arith.constant 0 : i32
    %c0_i32_2 = arith.constant 0 : i32
    return %c0_i32, %c0_i32_0, %c0_i32_1 : i32, i32, i32
  }
  func.func @transform_7(%arg0: i32) -> (i32, i32, i32) {
    %c0_i32 = arith.constant 0 : i32
    %c0_i32_0 = arith.constant 0 : i32
    %c0_i32_1 = arith.constant 0 : i32
    %c0_i32_2 = arith.constant 0 : i32
    return %c0_i32, %c0_i32_0, %c0_i32_1 : i32, i32, i32
  }
  func.func @transform_8(%arg0: i32) -> (i32, i32, i32) {
    %c0_i32 = arith.constant 0 : i32
    %c0_i32_0 = arith.constant 0 : i32
    %c0_i32_1 = arith.constant 0 : i32
    %c0_i32_2 = arith.constant 0 : i32
    return %c0_i32, %c0_i32_0, %c0_i32_1 : i32, i32, i32
  }
  func.func @transform_9(%arg0: i32) -> (i32, i32, i32) {
    %c0_i32 = arith.constant 0 : i32
    %c0_i32_0 = arith.constant 0 : i32
    %c0_i32_1 = arith.constant 0 : i32
    %c0_i32_2 = arith.constant 0 : i32
    return %c0_i32, %c0_i32_0, %c0_i32_1 : i32, i32, i32
  }
  func.func @transform_10(%arg0: i32) -> (i32, i32, i32) {
    %c0_i32 = arith.constant 0 : i32
    %c0_i32_0 = arith.constant 0 : i32
    %c0_i32_1 = arith.constant 0 : i32
    %c0_i32_2 = arith.constant 0 : i32
    return %c0_i32, %c0_i32_0, %c0_i32_1 : i32, i32, i32
  }
  func.func @transform_11(%arg0: i32) -> (i32, i32) {
    %c0_i32 = arith.constant 0 : i32
    %c0_i32_0 = arith.constant 0 : i32
    %c0_i32_1 = arith.constant 0 : i32
    return %c0_i32, %c0_i32_0 : i32, i32
  }
  func.func @transform_12(%arg0: i32) -> (i32, i32, i32) {
    %c0_i32 = arith.constant 0 : i32
    %c0_i32_0 = arith.constant 0 : i32
    %c0_i32_1 = arith.constant 0 : i32
    return %arg0, %c0_i32, %c0_i32_0 : i32, i32, i32
  }
}

</mosaic_0001>

<bundles_post_ra>
// kernel: tpu_custom_call.1
= control target key start
LH: loop header
LB: loop body
LE: loop exit
PB: predicated region body
PF: predicated region fallthrough
CT: control target
= control target key end

     0   :  { %vm91_vm0 = vcmask 261120   ;;  %s2018_s0 = inlined_call_operand.vmem [shape: f32[2,8,32], index: 0, kind: input, shape index: {}]   ;;  %s2019_s1 = inlined_call_operand.vmem [shape: f32[2,8,32], index: 1, kind: input, shape index: {}]   ;;  %s2020_s2 = inlined_call_operand.vmem [shape: f32[2,8,32], index: 2, kind: input, shape index: {}]   ;;  %s2021_s3 = inlined_call_operand.vmem [shape: f32[2,1,8], index: 3, kind: input, shape index: {}]   ;;  %s2022_s4 = inlined_call_operand.vmem [shape: bf16[4,32,8], index: 4, kind: input, shape index: {}]   ;;  %s2023_s5 = inlined_call_operand.vmem [shape: f32[4,1,8], index: 5, kind: input, shape index: {}]   ;;  %s2024_s6 = inlined_call_operand.vmem [shape: bf16[4,32,8], index: 6, kind: input, shape index: {}]   ;;  %s2025_s7 = inlined_call_operand.vmem [shape: f32[4,1,8], index: 7, kind: input, shape index: {}]   ;;  %s2026_s8 = inlined_call_operand.vmem [shape: bf16[4,32,8], index: 8, kind: input, shape index: {}]   ;;  %s2027_s9 = inlined_call_operand.vmem [shape: f32[4,1,8], index: 9, kind: input, shape index: {}]   ;;  %s2028_s10 = inlined_call_operand.vmem [shape: bf16[4,8,32], index: 10, kind: input, shape index: {}]   ;;  %s2029_s11 = inlined_call_operand.vmem [shape: f32[1,32], index: 11, kind: input, shape index: {}]   ;;  %s2030_s12 = inlined_call_operand.hbm [shape: f32[2,8,32], index: 12, kind: output, shape index: {}]  }
   0x1   :  { %v1511_v0 = vld [vmem:[%s2022_s4 + $0x8] sm:$0xff]  ;;  %v1513_v1 = vld [vmem:[%s2022_s4 + $0x18] sm:$0xff]  ;;  %v1510_v4 = vld [vmem:[%s2022_s4] sm:$0xff] }
   0x2   :  { %v1515_v2 = vld [vmem:[%s2022_s4 + $0x28] sm:$0xff]  ;;  %v1517_v3 = vld [vmem:[%s2022_s4 + $0x38] sm:$0xff]  ;;  %101 = vmatpush.bf16.msra.mxu0 %v1511_v0  ;;  %126 = vmatpush.bf16.msra.mxu1 %v1513_v1  ;;  %v1512_v5 = vld [vmem:[%s2022_s4 + $0x10] sm:$0xff] }
   0x3   :  { %v43_v6 = vld [vmem:[%s2018_s0] sm:$0xff]  ;;  %151 = vmatpush.bf16.msra.mxu2 %v1515_v2  ;;  %176 = vmatpush.bf16.msra.mxu3 %v1517_v3  ;;  %v1516_v8 = vld [vmem:[%s2022_s4 + $0x30] sm:$0xff]  ;;  %v1519_v10 = vld [vmem:[%s2024_s6 + $0x8] sm:$0xff] }
   0x4   :  { %v1514_v7 = vld [vmem:[%s2022_s4 + $0x20] sm:$0xff]  ;;  %v45_v9 = vpack.c.bf16 %v43_v6, %v43_v6  ;;  %v1521_v11 = vld [vmem:[%s2024_s6 + $0x18] sm:$0xff] }
   0x6   :  { %102 = vmatpush.bf16.msra.mxu0 %v1510_v4  ;;  %127 = vmatpush.bf16.msra.mxu1 %v1512_v5 }
   0x7   :  { %152 = vmatpush.bf16.msra.mxu2 %v1514_v7  ;;  %177 = vmatpush.bf16.msra.mxu3 %v1516_v8 }
   0x9   :  { %1374 = vmatmul.msk.bf16.vlgmr.msra.gmra.mxu0 %vm91_vm0, %v45_v9  ;;  %1383 = vmatmul.msk.bf16.vlgmr.msra.gmra.mxu1 %vm91_vm0, %v45_v9 }
   0xa   :  { %192 = vmatpush.bf16.msrb.mxu0 %v1511_v0  ;;  %205 = vmatpush.bf16.msrb.mxu1 %v1513_v1 }
   0xb   :  { %1392 = vmatmul.msk.bf16.vlgmr.msra.gmra.mxu2 %vm91_vm0, %v45_v9  ;;  %1401 = vmatmul.msk.bf16.vlgmr.msra.gmra.mxu3 %vm91_vm0, %v45_v9 }
   0xc   :  { %218 = vmatpush.bf16.msrb.mxu2 %v1515_v2  ;;  %231 = vmatpush.bf16.msrb.mxu3 %v1517_v3 }
   0xd   :  { %17 = vsyncpa [#allocation3], 0  ;;  %v1523_v12 = vld [vmem:[%s2024_s6 + $0x28] sm:$0xff]  ;;  %v1525_v13 = vld [vmem:[%s2024_s6 + $0x38] sm:$0xff]  ;;  %vm642_vm1 = vcmask 64512   ;;  %vm1024_vm2 = vcmask 1043456  }
   0xe   :  { %193 = vmatpush.bf16.msrb.mxu0 %v1510_v4  ;;  %206 = vmatpush.bf16.msrb.mxu1 %v1512_v5  ;;  %v1518_v14 = vld [vmem:[%s2024_s6] sm:$0xff]  ;;  %v1520_v15 = vld [vmem:[%s2024_s6 + $0x10] sm:$0xff]  ;;  %v44_v18 = vld [vmem:[%s2018_s0 + $0x8] sm:$0xff]  ;;  %s1354_s28 = sshll.u32 %s2030_s12, 4  ;;  %s1611_s29 = smov 128   ;;  %s1355_s28 = int_to_ptr.hbm [resolvable:$true] %s1354_s28 }
   0xf   :  { %v1522_v16 = vld [vmem:[%s2024_s6 + $0x20] sm:$0xff]  ;;  %v1524_v17 = vld [vmem:[%s2024_s6 + $0x30] sm:$0xff]  ;;  %v46_v19 = vpack.c.bf16 %v44_v18, %v44_v18  ;;  %v239_v22 = vld [vmem:[%s2019_s1 + $0x8] sm:$0xff]  ;;  %s1612_s30 = smov 8  }
  0x10   :  { %219 = vmatpush.bf16.msrb.mxu2 %v1514_v7  ;;  %232 = vmatpush.bf16.msrb.mxu3 %v1516_v8  ;;  %v238_v20 = vld [vmem:[%s2019_s1] sm:$0xff]  ;;  %v241_v23 = vpack.c.bf16 %v239_v22, %v239_v22  ;;  %v1531_v24 = vld [vmem:[%s2026_s8 + $0x28] sm:$0xff]  ;;  %v1529_v26 = vld [vmem:[%s2026_s8 + $0x18] sm:$0xff] }
  0x11   :  { %v240_v21 = vpack.c.bf16 %v238_v20, %v238_v20  ;;  %v1527_v25 = vld [vmem:[%s2026_s8 + $0x8] sm:$0xff]  ;;  %v1530_v27 = vld [vmem:[%s2026_s8 + $0x20] sm:$0xff]  ;;  %v1528_v29 = vld [vmem:[%s2026_s8 + $0x10] sm:$0xff] }
  0x12   :  { %295 = vmatpush.bf16.msra.mxu0 %v1519_v10  ;;  %320 = vmatpush.bf16.msra.mxu1 %v1521_v11  ;;  %v1526_v28 = vld [vmem:[%s2026_s8] sm:$0xff]  ;;  %v1533_v31 = vld [vmem:[%s2026_s8 + $0x38] sm:$0xff]  ;;  %v1532_v33 = vld [vmem:[%s2026_s8 + $0x30] sm:$0xff] }
  0x13   :  { %v432_v30 = vld [vmem:[%s2020_s2] sm:$0xff]  ;;  %v433_v34 = vld [vmem:[%s2020_s2 + $0x8] sm:$0xff] }
  0x14   :  { %345 = vmatpush.bf16.msra.mxu2 %v1523_v12  ;;  %370 = vmatpush.bf16.msra.mxu3 %v1525_v13  ;;  %v434_v32 = vpack.c.bf16 %v432_v30, %v432_v30  ;;  %v435_v35 = vpack.c.bf16 %v433_v34, %v433_v34  ;;  %v1542_v50 = vld [vmem:[%s2025_s7] ss:$0 sm:$0xff]  ;;  %v1543_v51 = vld [vmem:[%s2025_s7 + $0x1] ss:$0 sm:$0xff]  ;;  %v1544_v62 = vld [vmem:[%s2025_s7 + $0x2] ss:$0 sm:$0xff] }
  0x15   :  { %v1538_v58 = vld [vmem:[%s2023_s5] ss:$0 sm:$0xff]  ;;  %v1539_v61 = vld [vmem:[%s2023_s5 + $0x1] ss:$0 sm:$0xff]  ;;  %v1545_v63 = vld [vmem:[%s2025_s7 + $0x3] ss:$0 sm:$0xff] }
  0x16   :  { %296 = vmatpush.bf16.msra.mxu0 %v1518_v14  ;;  %321 = vmatpush.bf16.msra.mxu1 %v1520_v15 }
  0x18   :  { %346 = vmatpush.bf16.msra.mxu2 %v1522_v16  ;;  %371 = vmatpush.bf16.msra.mxu3 %v1524_v17 }
  0x19   :  { %1402 = vmatmul.msk.bf16.vlgmr.msrb.gmra.mxu0 %vm91_vm0, %v46_v19  ;;  %1403 = vmatmul.msk.bf16.vlgmr.msrb.gmra.mxu1 %vm91_vm0, %v46_v19 }
  0x1a   :  { %386 = vmatpush.bf16.msrb.mxu0 %v1519_v10  ;;  %399 = vmatpush.bf16.msrb.mxu1 %v1521_v11  ;;  %v1540_v10 = vld [vmem:[%s2023_s5 + $0x2] ss:$0 sm:$0xff]  ;;  %v1541_v11 = vld [vmem:[%s2023_s5 + $0x3] ss:$0 sm:$0xff] }
  0x1b   :  { %1404 = vmatmul.msk.bf16.vlgmr.msrb.gmra.mxu2 %vm91_vm0, %v46_v19  ;;  %1405 = vmatmul.msk.bf16.vlgmr.msrb.gmra.mxu3 %vm91_vm0, %v46_v19 }
  0x1c   :  { %412 = vmatpush.bf16.msrb.mxu2 %v1523_v12  ;;  %425 = vmatpush.bf16.msrb.mxu3 %v1525_v13 }
  0x1e   :  { %387 = vmatpush.bf16.msrb.mxu0 %v1518_v14  ;;  %400 = vmatpush.bf16.msrb.mxu1 %v1520_v15 }
  0x20   :  { %413 = vmatpush.bf16.msrb.mxu2 %v1522_v16  ;;  %426 = vmatpush.bf16.msrb.mxu3 %v1524_v17 }
  0x29   :  { %1414 = vmatmul.msk.bf16.vlgmr.msra.gmra.mxu0 %vm91_vm0, %v240_v21  ;;  %1423 = vmatmul.msk.bf16.vlgmr.msra.gmra.mxu1 %vm91_vm0, %v240_v21 }
  0x2a   :  { %489 = vmatpush.bf16.msra.mxu0 %v1527_v25  ;;  %514 = vmatpush.bf16.msra.mxu1 %v1529_v26 }
  0x2b   :  { %1432 = vmatmul.msk.bf16.vlgmr.msra.gmra.mxu2 %vm91_vm0, %v240_v21  ;;  %1441 = vmatmul.msk.bf16.vlgmr.msra.gmra.mxu3 %vm91_vm0, %v240_v21 }
  0x2c   :  { %539 = vmatpush.bf16.msra.mxu2 %v1531_v24  ;;  %564 = vmatpush.bf16.msra.mxu3 %v1533_v31 }
  0x2e   :  { %490 = vmatpush.bf16.msra.mxu0 %v1526_v28  ;;  %515 = vmatpush.bf16.msra.mxu1 %v1528_v29 }
  0x30   :  { %540 = vmatpush.bf16.msra.mxu2 %v1530_v27  ;;  %565 = vmatpush.bf16.msra.mxu3 %v1532_v33 }
  0x39   :  { %1442 = vmatmul.msk.bf16.vlgmr.msrb.gmra.mxu0 %vm91_vm0, %v241_v23  ;;  %1443 = vmatmul.msk.bf16.vlgmr.msrb.gmra.mxu1 %vm91_vm0, %v241_v23 }
  0x3a   :  { %580 = vmatpush.bf16.msrb.mxu0 %v1527_v25  ;;  %593 = vmatpush.bf16.msrb.mxu1 %v1529_v26 }
  0x3b   :  { %1444 = vmatmul.msk.bf16.vlgmr.msrb.gmra.mxu2 %vm91_vm0, %v241_v23  ;;  %1445 = vmatmul.msk.bf16.vlgmr.msrb.gmra.mxu3 %vm91_vm0, %v241_v23 }
  0x3c   :  { %606 = vmatpush.bf16.msrb.mxu2 %v1531_v24  ;;  %619 = vmatpush.bf16.msrb.mxu3 %v1533_v31 }
  0x3e   :  { %581 = vmatpush.bf16.msrb.mxu0 %v1526_v28  ;;  %594 = vmatpush.bf16.msrb.mxu1 %v1528_v29 }
  0x40   :  { %607 = vmatpush.bf16.msrb.mxu2 %v1530_v27  ;;  %620 = vmatpush.bf16.msrb.mxu3 %v1532_v33 }
  0x49   :  { %1454 = vmatmul.msk.bf16.vlgmr.msra.gmra.mxu0 %vm91_vm0, %v434_v32  ;;  %1463 = vmatmul.msk.bf16.vlgmr.msra.gmra.mxu1 %vm91_vm0, %v434_v32 }
  0x4b   :  { %1472 = vmatmul.msk.bf16.vlgmr.msra.gmra.mxu2 %vm91_vm0, %v434_v32  ;;  %1481 = vmatmul.msk.bf16.vlgmr.msra.gmra.mxu3 %vm91_vm0, %v434_v32 }
  0x59   :  { %1482 = vmatmul.msk.bf16.vlgmr.msrb.gmra.mxu0 %vm91_vm0, %v435_v35  ;;  %1483 = vmatmul.msk.bf16.vlgmr.msrb.gmra.mxu1 %vm91_vm0, %v435_v35 }
  0x5b   :  { %1484 = vmatmul.msk.bf16.vlgmr.msrb.gmra.mxu2 %vm91_vm0, %v435_v35  ;;  %1485 = vmatmul.msk.bf16.vlgmr.msrb.gmra.mxu3 %vm91_vm0, %v435_v35 }
  0x86   :  { %v104_v36 = vpop.f32.mrf.mxu0  ;;  %v129_v37 = vpop.f32.mrf.mxu1 }
  0x87   :  { %v105_v4 = vadd.f32 %v1538_v58, %v104_v36  ;;  %v130_v5 = vadd.f32 %v1539_v61, %v129_v37 }
  0x89   :  { %v626_v14 = vpack.c.bf16 %v105_v4, %v105_v4  ;;  %v627_v15 = vpack.c.bf16 %v130_v5, %v130_v5  ;;  %v1549_v5 = vld [vmem:[%s2027_s9 + $0x3] ss:$0 sm:$0xff] }
  0x8e   :  { %v154_v38 = vpop.f32.mrf.mxu2  ;;  %v179_v39 = vpop.f32.mrf.mxu3 }
  0x8f   :  { %v106_v40 = vpop.f32.mrf.mxu0  ;;  %v131_v41 = vpop.f32.mrf.mxu1  ;;  %v155_v18 = vadd.f32 %v1540_v10, %v154_v38  ;;  %v180_v19 = vadd.f32 %v1541_v11, %v179_v39 }
  0x91   :  { %v628_v26 = vpack.c.bf16 %v155_v18, %v155_v18  ;;  %v629_v27 = vpack.c.bf16 %v180_v19, %v180_v19 }
  0x96   :  { %v156_v42 = vpop.f32.mrf.mxu2  ;;  %v181_v43 = vpop.f32.mrf.mxu3 }
  0x97   :  { %v1792_v44 = vpop.f32.mrf.mxu0  ;;  %v1794_v45 = vpop.f32.mrf.mxu1 }
  0x98   :  { %v196_v34 = vadd.f32 %v1538_v58, %v1792_v44  ;;  %v209_v35 = vadd.f32 %v1539_v61, %v1794_v45  ;;  %v1548_v58 = vld [vmem:[%s2027_s9 + $0x2] ss:$0 sm:$0xff] }
  0x9a   :  { %v630_v42 = vpack.c.bf16 %v196_v34, %v196_v34  ;;  %v631_v43 = vpack.c.bf16 %v209_v35, %v209_v35 }
  0x9e   :  { %v1796_v46 = vpop.f32.mrf.mxu2  ;;  %v1798_v47 = vpop.f32.mrf.mxu3 }
  0x9f   :  { %v197_v48 = vpop.f32.mrf.mxu0  ;;  %v210_v49 = vpop.f32.mrf.mxu1  ;;  %v235_v44 = vadd.f32 %v1541_v11, %v1798_v47 }
  0xa6   :  { %v223_v52 = vpop.f32.mrf.mxu2  ;;  %v236_v53 = vpop.f32.mrf.mxu3 }
  0xa7   :  { %v298_v54 = vpop.f32.mrf.mxu0  ;;  %v323_v55 = vpop.f32.mrf.mxu1  ;;  %v633_v53 = vpack.c.bf16 %v235_v44, %v235_v44 }
  0xa8   :  { %v299_v56 = vadd.f32 %v1542_v50, %v298_v54  ;;  %v324_v57 = vadd.f32 %v1543_v51, %v323_v55  ;;  %v1546_v54 = vld [vmem:[%s2027_s9] ss:$0 sm:$0xff] }
  0xaa   :  { %v634_v59 = vpack.c.bf16 %v299_v56, %v299_v56  ;;  %v635_v60 = vpack.c.bf16 %v324_v57, %v324_v57 }
  0xac   :  { %v647_v0 = vsel %vm642_vm1, %v634_v59, 0  ;;  %v666_v1 = vsel %vm642_vm1, %v635_v60, 0 }
  0xad   :  { %656 = vmatpush.bf16.xpose.msra.mxu0 %v647_v0  ;;  %675 = vmatpush.bf16.xpose.msra.mxu1 %v666_v1 }
  0xae   :  { %v348_v2 = vpop.f32.mrf.mxu2  ;;  %v373_v3 = vpop.f32.mrf.mxu3 }
  0xaf   :  { %v349_v6 = vadd.f32 %v1544_v62, %v348_v2  ;;  %v374_v7 = vadd.f32 %v1545_v63, %v373_v3  ;;  %v300_v8 = vpop.f32.mrf.mxu0  ;;  %v325_v9 = vpop.f32.mrf.mxu1 }
  0xb1   :  { %v636_v12 = vpack.c.bf16 %v349_v6, %v349_v6  ;;  %v637_v13 = vpack.c.bf16 %v374_v7, %v374_v7 }
  0xb3   :  { %v685_v16 = vsel %vm642_vm1, %v636_v12, 0  ;;  %v704_v17 = vsel %vm642_vm1, %v637_v13, 0 }
  0xb4   :  { %694 = vmatpush.bf16.xpose.msra.mxu2 %v685_v16  ;;  %713 = vmatpush.bf16.xpose.msra.mxu3 %v704_v17 }
  0xb5   :  { %1486 = vmatmul.msk.bf16.vlgmr.msra.gmra.mxu0 %vm642_vm1, %v626_v14  ;;  %1487 = vmatmul.msk.bf16.vlgmr.msra.gmra.mxu1 %vm642_vm1, %v627_v15 }
  0xb6   :  { %v350_v20 = vpop.f32.mrf.mxu2  ;;  %v375_v21 = vpop.f32.mrf.mxu3 }
  0xb7   :  { %v389_v22 = vpop.f32.mrf.mxu0  ;;  %v402_v23 = vpop.f32.mrf.mxu1 }
  0xb8   :  { %v390_v24 = vadd.f32 %v1542_v50, %v389_v22  ;;  %v403_v25 = vadd.f32 %v1543_v51, %v402_v23  ;;  %v222_v50 = vadd.f32 %v1540_v10, %v1796_v46  ;;  %v1547_v46 = vld [vmem:[%s2027_s9 + $0x1] ss:$0 sm:$0xff] }
  0xba   :  { %v638_v28 = vpack.c.bf16 %v390_v24, %v390_v24  ;;  %v639_v29 = vpack.c.bf16 %v403_v25, %v403_v25  ;;  %v632_v52 = vpack.c.bf16 %v222_v50, %v222_v50 }
  0xbb   :  { %1488 = vmatmul.msk.bf16.vlgmr.msra.gmra.mxu2 %vm642_vm1, %v628_v26  ;;  %1489 = vmatmul.msk.bf16.vlgmr.msra.gmra.mxu3 %vm642_vm1, %v629_v27 }
  0xbc   :  { %v723_v30 = vsel %vm642_vm1, %v638_v28, 0  ;;  %v742_v31 = vsel %vm642_vm1, %v639_v29, 0 }
  0xbd   :  { %732 = vmatpush.bf16.xpose.msrb.mxu0 %v723_v30  ;;  %751 = vmatpush.bf16.xpose.msrb.mxu1 %v742_v31 }
  0xbe   :  { %v415_v32 = vpop.f32.mrf.mxu2  ;;  %v428_v33 = vpop.f32.mrf.mxu3 }
  0xbf   :  { %v416_v36 = vadd.f32 %v1544_v62, %v415_v32  ;;  %v429_v37 = vadd.f32 %v1545_v63, %v428_v33  ;;  %v391_v38 = vpop.f32.mrf.mxu0  ;;  %v404_v39 = vpop.f32.mrf.mxu1  ;;  %v795_v32 = vld [vmem:[%s2021_s3] sm:$0x1]  ;;  %v1609_v33 = vmov 0  }
  0xc0   :  { %vm797_vm3 = vcmp.gt.f32.partialorder %v795_v32, 0.5 }
  0xc1   :  { %v640_v40 = vpack.c.bf16 %v416_v36, %v416_v36  ;;  %v641_v41 = vpack.c.bf16 %v429_v37, %v429_v37  ;;  %v799_v34 = vsel %vm797_vm3, 1, %v1609_v33 }
  0xc2   :  { %v801_v35 = vperm.slane %v799_v34, 0 }
  0xc3   :  { %v761_v48 = vsel %vm642_vm1, %v640_v40, 0  ;;  %v780_v49 = vsel %vm642_vm1, %v641_v41, 0  ;;  %v796_v40 = vld [vmem:[%s2021_s3 + $0x1] sm:$0x1] }
  0xc4   :  { %770 = vmatpush.bf16.xpose.msrb.mxu2 %v761_v48  ;;  %789 = vmatpush.bf16.xpose.msrb.mxu3 %v780_v49  ;;  %vm1867_vm4 = vcmp.eq.s32.totalorder %v801_v35, 1  ;;  %vm798_vm5 = vcmp.gt.f32.partialorder %v796_v40, 0.5 }
  0xc5   :  { %1490 = vmatmul.msk.bf16.vlgmr.msrb.gmra.mxu0 %vm642_vm1, %v630_v42  ;;  %1491 = vmatmul.msk.bf16.vlgmr.msrb.gmra.mxu1 %vm642_vm1, %v631_v43  ;;  %v800_v43 = vsel %vm798_vm5, 1, %v1609_v33 }
  0xc6   :  { %v417_v45 = vpop.f32.mrf.mxu2  ;;  %v430_v51 = vpop.f32.mrf.mxu3  ;;  %v802_v44 = vperm.slane %v800_v43, 0 }
  0xc7   :  { %v492_v47 = vpop.f32.mrf.mxu0  ;;  %v517_v55 = vpop.f32.mrf.mxu1 }
  0xc8   :  { %v493_v56 = vadd.f32 %v1546_v54, %v492_v47  ;;  %v518_v57 = vadd.f32 %v1547_v46, %v517_v55  ;;  %vm1883_vm6 = vcmp.eq.s32.totalorder %v802_v44, 1 }
  0xca   :  { %v1013_v59 = vpack.c.bf16 %v493_v56, %v493_v56  ;;  %v1014_v60 = vpack.c.bf16 %v518_v57, %v518_v57 }
  0xcb   :  { %1492 = vmatmul.msk.bf16.vlgmr.msrb.gmra.mxu2 %vm642_vm1, %v632_v52  ;;  %1493 = vmatmul.msk.bf16.vlgmr.msrb.gmra.mxu3 %vm642_vm1, %v633_v53 }
  0xcc   :  { %v1026_v62 = vsel %vm1024_vm2, %v1013_v59, 0  ;;  %v1045_v63 = vsel %vm1024_vm2, %v1014_v60, 0 }
  0xcd   :  { %1035 = vmatpush.bf16.msra.mxu0 %v1026_v62  ;;  %1054 = vmatpush.bf16.msra.mxu1 %v1045_v63 }
  0xce   :  { %v542_v61 = vpop.f32.mrf.mxu2  ;;  %v567_v6 = vpop.f32.mrf.mxu3 }
  0xcf   :  { %v543_v0 = vadd.f32 %v1548_v58, %v542_v61  ;;  %v494_v2 = vpop.f32.mrf.mxu0  ;;  %v519_v3 = vpop.f32.mrf.mxu1  ;;  %v568_v8 = vadd.f32 %v1549_v5, %v567_v6 }
  0xd1   :  { %v1015_v1 = vpack.c.bf16 %v543_v0, %v543_v0  ;;  %v1016_v9 = vpack.c.bf16 %v568_v8, %v568_v8 }
  0xd3   :  { %v1064_v4 = vsel %vm1024_vm2, %v1015_v1, 0  ;;  %v1083_v12 = vsel %vm1024_vm2, %v1016_v9, 0 }
  0xd4   :  { %1073 = vmatpush.bf16.msra.mxu2 %v1064_v4  ;;  %1092 = vmatpush.bf16.msra.mxu3 %v1083_v12 }
  0xd6   :  { %v544_v7 = vpop.f32.mrf.mxu2  ;;  %v569_v17 = vpop.f32.mrf.mxu3 }
  0xd7   :  { %v583_v10 = vpop.f32.mrf.mxu0  ;;  %v596_v11 = vpop.f32.mrf.mxu1 }
  0xd8   :  { %v584_v13 = vadd.f32 %v1546_v54, %v583_v10  ;;  %v597_v14 = vadd.f32 %v1547_v46, %v596_v11 }
  0xda   :  { %v1017_v15 = vpack.c.bf16 %v584_v13, %v584_v13  ;;  %v1018_v16 = vpack.c.bf16 %v597_v14, %v597_v14 }
  0xdc   :  { %v1102_v19 = vsel %vm1024_vm2, %v1017_v15, 0  ;;  %v1121_v20 = vsel %vm1024_vm2, %v1018_v16, 0 }
  0xdd   :  { %1111 = vmatpush.bf16.msrb.mxu0 %v1102_v19  ;;  %1130 = vmatpush.bf16.msrb.mxu1 %v1121_v20 }
  0xde   :  { %v609_v18 = vpop.f32.mrf.mxu2  ;;  %v622_v26 = vpop.f32.mrf.mxu3 }
  0xdf   :  { %v610_v21 = vadd.f32 %v1548_v58, %v609_v18  ;;  %v585_v23 = vpop.f32.mrf.mxu0  ;;  %v598_v24 = vpop.f32.mrf.mxu1  ;;  %v623_v28 = vadd.f32 %v1549_v5, %v622_v26 }
  0xe1   :  { %v1019_v22 = vpack.c.bf16 %v610_v21, %v610_v21  ;;  %v1020_v29 = vpack.c.bf16 %v623_v28, %v623_v28 }
  0xe3   :  { %v1140_v25 = vsel %vm1024_vm2, %v1019_v22, 0  ;;  %v1159_v30 = vsel %vm1024_vm2, %v1020_v29, 0 }
  0xe4   :  { %1149 = vmatpush.bf16.msrb.mxu2 %v1140_v25  ;;  %1168 = vmatpush.bf16.msrb.mxu3 %v1159_v30 }
  0xe6   :  { %v611_v27 = vpop.f32.mrf.mxu2  ;;  %v624_v31 = vpop.f32.mrf.mxu3 }
 0x132   :  { %v658_v37 = vpop.f32.mrf.mxu0  ;;  %v677_v38 = vpop.f32.mrf.mxu1 }
 0x133   :  { %v805_v39 = vsel %vm1867_vm4, -1e+09, %v658_v37  ;;  %v806_v42 = vsel %vm1867_vm4, -1e+09, %v677_v38 }
 0x134   :  { %v813_v41 = vsel %vm642_vm1, %v805_v39, -inf  ;;  %v816_v50 = vsel %vm642_vm1, %v806_v42, -inf }
 0x135   :  { %814 = vmax.xlane.f32.xlu1 %v813_v41 }
 0x13a   :  { %v660_v48 = vpop.f32.mrf.mxu0  ;;  %v679_v49 = vpop.f32.mrf.mxu1 }
 0x13d   :  { %817 = vmax.xlane.f32.xlu1 %v816_v50 }
 0x13e   :  { %v696_v45 = vpop.f32.mrf.mxu2  ;;  %v715_v51 = vpop.f32.mrf.mxu3 }
 0x13f   :  { %v807_v52 = vsel %vm1867_vm4, -1e+09, %v696_v45  ;;  %v808_v57 = vsel %vm1867_vm4, -1e+09, %v715_v51 }
 0x140   :  { %v819_v53 = vsel %vm642_vm1, %v807_v52, -inf  ;;  %v822_v60 = vsel %vm642_vm1, %v808_v57, -inf }
 0x141   :  { %820 = vmax.xlane.f32.xlu0 %v819_v53 }
 0x142   :  { %v734_v46 = vpop.f32.mrf.mxu0  ;;  %v753_v47 = vpop.f32.mrf.mxu1 }
 0x143   :  { %v810_v55 = vsel %vm1883_vm6, -1e+09, %v753_v47  ;;  %v809_v63 = vsel %vm1883_vm6, -1e+09, %v734_v46 }
 0x144   :  { %v828_v56 = vsel %vm642_vm1, %v810_v55, -inf  ;;  %v825_v4 = vsel %vm642_vm1, %v809_v63, -inf }
 0x145   :  { %829 = vmax.xlane.f32.xlu1 %v828_v56 }
 0x146   :  { %v698_v58 = vpop.f32.mrf.mxu2  ;;  %v717_v59 = vpop.f32.mrf.mxu3 }
 0x149   :  { %823 = vmax.xlane.f32.xlu0 %v822_v60 }
 0x14a   :  { %v736_v61 = vpop.f32.mrf.mxu0  ;;  %v755_v62 = vpop.f32.mrf.mxu1 }
 0x14e   :  { %v772_v0 = vpop.f32.mrf.mxu2  ;;  %v791_v1 = vpop.f32.mrf.mxu3 }
 0x14f   :  { %v811_v2 = vsel %vm1883_vm6, -1e+09, %v772_v0  ;;  %v812_v5 = vsel %vm1883_vm6, -1e+09, %v791_v1 }
 0x150   :  { %v831_v3 = vsel %vm642_vm1, %v811_v2, -inf  ;;  %v834_v8 = vsel %vm642_vm1, %v812_v5, -inf }
 0x151   :  { %832 = vmax.xlane.f32.xlu2 %v831_v3  ;;  %826 = vmax.xlane.f32.xlu0 %v825_v4 }
 0x156   :  { %v774_v6 = vpop.f32.mrf.mxu2  ;;  %v793_v7 = vpop.f32.mrf.mxu3 }
 0x159   :  { %835 = vmax.xlane.f32.xlu2 %v834_v8 }
 0x1a8   :  { %v815_v9 = vpop.xlane.xlu1 %814 }
 0x1a9   :  { %v837_v10 = vsub.f32 %v805_v39, %v815_v9 }
 0x1ab   :  { %v845_v11 = vmul.f32 1.442695, %v837_v10 }
 0x1ad   :  { %1551 = vpow2.f32 %v845_v11 }
 0x1b0   :  { %v818_v13 = vpop.xlane.xlu1 %817 }
 0x1b1   :  { %v838_v17 = vsub.f32 %v806_v42, %v818_v13 }
 0x1b3   :  { %v1902_v12 = vpop.eup %1551  ;;  %v847_v19 = vmul.f32 1.442695, %v838_v17 }
 0x1b4   :  { %v821_v14 = vpop.xlane.xlu0 %820  ;;  %v861_v15 = vsel %vm642_vm1, %v1902_v12, 0.0 }
 0x1b5   :  { %v839_v16 = vsub.f32 %v807_v52, %v821_v14  ;;  %862 = vadd.xlane.f32.xlu1 %v861_v15 }
 0x1b7   :  { %v849_v18 = vmul.f32 1.442695, %v839_v16 }
 0x1b8   :  { %v830_v25 = vpop.xlane.xlu1 %829 }
 0x1b9   :  { %1553 = vpow2.f32 %v849_v18  ;;  %v842_v32 = vsub.f32 %v810_v55, %v830_v25 }
 0x1ba   :  { %1555 = vpow2.f32 %v847_v19 }
 0x1bb   :  { %v855_v37 = vmul.f32 1.442695, %v842_v32 }
 0x1bc   :  { %v824_v20 = vpop.xlane.xlu0 %823 }
 0x1bd   :  { %v840_v21 = vsub.f32 %v808_v57, %v824_v20 }
 0x1bf   :  { %v1906_v22 = vpop.eup %1553  ;;  %v851_v23 = vmul.f32 1.442695, %v840_v21 }
 0x1c0   :  { %v867_v24 = vsel %vm642_vm1, %v1906_v22, 0.0  ;;  %v1910_v28 = vpop.eup %1555 }
 0x1c1   :  { %1557 = vpow2.f32 %v851_v23  ;;  %868 = vadd.xlane.f32.xlu2 %v867_v24  ;;  %v864_v35 = vsel %vm642_vm1, %v1910_v28, 0.0 }
 0x1c4   :  { %v833_v26 = vpop.xlane.xlu2 %832  ;;  %v827_v27 = vpop.xlane.xlu0 %826 }
 0x1c5   :  { %v843_v29 = vsub.f32 %v811_v2, %v833_v26  ;;  %v841_v30 = vsub.f32 %v809_v63, %v827_v27 }
 0x1c7   :  { %v1912_v31 = vpop.eup %1557  ;;  %v857_v33 = vmul.f32 1.442695, %v843_v29  ;;  %v853_v34 = vmul.f32 1.442695, %v841_v30 }
 0x1c8   :  { %v870_v36 = vsel %vm642_vm1, %v1912_v31, 0.0 }
 0x1c9   :  { %1559 = vpow2.f32 %v857_v33  ;;  %865 = vadd.xlane.f32.xlu2 %v864_v35  ;;  %871 = vadd.xlane.f32.xlu0 %v870_v36 }
 0x1ca   :  { %1561 = vpow2.f32 %v853_v34 }
 0x1cb   :  { %1563 = vpow2.f32 %v855_v37 }
 0x1cc   :  { %v836_v38 = vpop.xlane.xlu2 %835 }
 0x1cd   :  { %v844_v39 = vsub.f32 %v812_v5, %v836_v38 }
 0x1cf   :  { %v1918_v40 = vpop.eup %1559  ;;  %v859_v41 = vmul.f32 1.442695, %v844_v39 }
 0x1d0   :  { %v1920_v42 = vpop.eup %1561  ;;  %v879_v43 = vsel %vm642_vm1, %v1918_v40, 0.0 }
 0x1d1   :  { %1565 = vpow2.f32 %v859_v41  ;;  %880 = vadd.xlane.f32.xlu0 %v879_v43  ;;  %v873_v48 = vsel %vm642_vm1, %v1920_v42, 0.0  ;;  %v1926_v49 = vpop.eup %1563 }
 0x1d2   :  { %874 = vadd.xlane.f32.xlu2 %v873_v48  ;;  %v876_v45 = vsel %vm642_vm1, %v1926_v49, 0.0 }
 0x1d7   :  { %v1928_v50 = vpop.eup %1565 }
 0x1d8   :  { %v882_v44 = vsel %vm642_vm1, %v1928_v50, 0.0 }
 0x1d9   :  { %883 = vadd.xlane.f32.xlu1 %v882_v44  ;;  %877 = vadd.xlane.f32.xlu0 %v876_v45 }
 0x228   :  { %v863_v51 = vpop.xlane.xlu1 %862 }
 0x229   :  { %1567 = vrcp.f32 %v863_v51  ;;  %v896_v46 = vand.u32 2147483648, %v863_v51  ;;  %v894_v55 = vand.u32 2147483647, %v863_v51  ;;  %vm890_vm8 = vweird.f32 %v863_v51 }
 0x22b   :  { %v897_v58 = vor.u32 1.1754944e-38, %v896_v46  ;;  %vm895_vm10 = vcmp.eq.f32.partialorder %v894_v55, 8.507059e+37 }
 0x22f   :  { %v1568_v52 = vpop.eup %1567 }
 0x230   :  { %v886_v53 = vmul.f32 %v1568_v52, %v863_v51  ;;  %vm891_vm7 = vweird.f32 %v1568_v52 }
 0x231   :  { %vm892_vm9 = vmor %vm890_vm8, %vm891_vm7 }
 0x232   :  { %v887_v54 = vsub.f32 1.0, %v886_v53 }
 0x234   :  { %v888_v47 = vmul.f32 %v1568_v52, %v887_v54  ;;  %v869_v56 = vpop.xlane.xlu2 %868 }
 0x235   :  { %1569 = vrcp.f32 %v869_v56  ;;  %v926_v4 = vand.u32 2147483648, %v869_v56  ;;  %v924_v6 = vand.u32 2147483647, %v869_v56  ;;  %vm920_vm12 = vweird.f32 %v869_v56 }
 0x236   :  { %v889_v57 = vadd.f32 %v1568_v52, %v888_v47 }
 0x237   :  { %v927_v9 = vor.u32 1.1754944e-38, %v926_v4  ;;  %vm925_vm14 = vcmp.eq.f32.partialorder %v924_v6, 8.507059e+37 }
 0x238   :  { %v893_v59 = vsel %vm892_vm9, %v1568_v52, %v889_v57 }
 0x239   :  { %v898_v60 = vsel %vm895_vm10, %v897_v58, %v893_v59 }
 0x23a   :  { %v899_v61 = vmul.f32 %v1902_v12, %v898_v60 }
 0x23b   :  { %v1570_v62 = vpop.eup %1569 }
 0x23c   :  { %v916_v63 = vmul.f32 %v1570_v62, %v869_v56  ;;  %v866_v0 = vpop.xlane.xlu2 %865  ;;  %v872_v1 = vpop.xlane.xlu0 %871  ;;  %v1005_v2 = vpack.c.bf16 %v899_v61, %v899_v61  ;;  %vm921_vm11 = vweird.f32 %v1570_v62 }
 0x23d   :  { %1571 = vrcp.f32 %v866_v0  ;;  %vm922_vm13 = vmor %vm920_vm12, %vm921_vm11  ;;  %v909_v19 = vand.u32 2147483647, %v866_v0  ;;  %v911_v20 = vand.u32 2147483648, %v866_v0  ;;  %v941_v24 = vand.u32 2147483648, %v872_v1 }
 0x23e   :  { %v917_v3 = vsub.f32 1.0, %v916_v63  ;;  %1573 = vrcp.f32 %v872_v1  ;;  %1494 = vmatmul.msk.bf16.vlgmr.msra.gmra.mxu0 %vm642_vm1, %v1005_v2  ;;  %v939_v27 = vand.u32 2147483647, %v872_v1  ;;  %vm905_vm4 = vweird.f32 %v866_v0 }
 0x23f   :  { %vm935_vm6 = vweird.f32 %v872_v1  ;;  %vm910_vm7 = vcmp.eq.f32.partialorder %v909_v19, 8.507059e+37  ;;  %v942_v35 = vor.u32 1.1754944e-38, %v941_v24 }
 0x240   :  { %v918_v5 = vmul.f32 %v1570_v62, %v917_v3  ;;  %vm940_vm9 = vcmp.eq.f32.partialorder %v939_v27, 8.507059e+37 }
 0x242   :  { %v919_v7 = vadd.f32 %v1570_v62, %v918_v5 }
 0x243   :  { %v1572_v8 = vpop.eup %1571 }
 0x244   :  { %v1574_v10 = vpop.eup %1573  ;;  %v923_v11 = vsel %vm922_vm13, %v1570_v62, %v919_v7  ;;  %v901_v12 = vmul.f32 %v1572_v8, %v866_v0  ;;  %v1936_v13 = vpop.xlane.xlu0 %880  ;;  %vm906_vm15 = vweird.f32 %v1572_v8 }
 0x245   :  { %v928_v14 = vsel %vm925_vm14, %v927_v9, %v923_v11  ;;  %v931_v15 = vmul.f32 %v1574_v10, %v872_v1  ;;  %v1938_v16 = vpop.xlane.xlu2 %874  ;;  %1575 = vrcp.f32 %v1936_v13  ;;  %vm936_vm3 = vweird.f32 %v1574_v10  ;;  %vm907_vm5 = vmor %vm905_vm4, %vm906_vm15 }
 0x246   :  { %v929_v17 = vmul.f32 %v1906_v22, %v928_v14  ;;  %v902_v18 = vsub.f32 1.0, %v901_v12  ;;  %1577 = vrcp.f32 %v1938_v16  ;;  %v912_v22 = vor.u32 1.1754944e-38, %v911_v20  ;;  %vm937_vm8 = vmor %vm935_vm6, %vm936_vm3 }
 0x247   :  { %v932_v21 = vsub.f32 1.0, %v931_v15  ;;  %v956_v53 = vand.u32 2147483648, %v1938_v16  ;;  %v986_v54 = vand.u32 2147483648, %v1936_v13  ;;  %v984_v47 = vand.u32 2147483647, %v1936_v13 }
 0x248   :  { %v903_v23 = vmul.f32 %v1572_v8, %v902_v18  ;;  %v1007_v25 = vpack.c.bf16 %v929_v17, %v929_v17  ;;  %vm980_vm12 = vweird.f32 %v1936_v13  ;;  %vm950_vm13 = vweird.f32 %v1938_v16 }
 0x249   :  { %v933_v26 = vmul.f32 %v1574_v10, %v932_v21  ;;  %v987_v59 = vor.u32 1.1754944e-38, %v986_v54  ;;  %v957_v61 = vor.u32 1.1754944e-38, %v956_v53  ;;  %vm985_vm3 = vcmp.eq.f32.partialorder %v984_v47, 8.507059e+37 }
 0x24a   :  { %v904_v29 = vadd.f32 %v1572_v8, %v903_v23  ;;  %1496 = vmatmul.msk.bf16.vlgmr.msra.gmra.mxu2 %vm642_vm1, %v1007_v25 }
 0x24b   :  { %v1576_v30 = vpop.eup %1575  ;;  %v934_v32 = vadd.f32 %v1574_v10, %v933_v26 }
 0x24c   :  { %v1578_v33 = vpop.eup %1577  ;;  %v908_v34 = vsel %vm907_vm5, %v1572_v8, %v904_v29  ;;  %v976_v36 = vmul.f32 %v1576_v30, %v1936_v13  ;;  %v1945_v37 = vpop.xlane.xlu1 %883  ;;  %vm981_vm10 = vweird.f32 %v1576_v30  ;;  %v1174_v29 = vld [vmem:[%s2028_s10] sm:$0xf] }
 0x24d   :  { %v913_v38 = vsel %vm910_vm7, %v912_v22, %v908_v34  ;;  %v938_v39 = vsel %vm937_vm8, %v1574_v10, %v934_v32  ;;  %v946_v41 = vmul.f32 %v1578_v33, %v1938_v16  ;;  %v1948_v43 = vpop.xlane.xlu0 %877  ;;  %1579 = vrcp.f32 %v1945_v37  ;;  %vm982_vm14 = vmor %vm980_vm12, %vm981_vm10 }
 0x24e   :  { %v914_v48 = vmul.f32 %v1910_v28, %v913_v38  ;;  %v943_v44 = vsel %vm940_vm9, %v942_v35, %v938_v39  ;;  %v977_v45 = vsub.f32 1.0, %v976_v36  ;;  %1581 = vrcp.f32 %v1948_v43 }
 0x24f   :  { %v944_v51 = vmul.f32 %v1912_v31, %v943_v44  ;;  %v947_v52 = vsub.f32 1.0, %v946_v41  ;;  %vm951_vm11 = vweird.f32 %v1578_v33  ;;  %v954_v28 = vand.u32 2147483647, %v1938_v16 }
 0x250   :  { %v978_v46 = vmul.f32 %v1576_v30, %v977_v45  ;;  %v1006_v57 = vpack.c.bf16 %v914_v48, %v914_v48  ;;  %vm952_vm15 = vmor %vm950_vm13, %vm951_vm11  ;;  %v999_v8 = vand.u32 2147483647, %v1945_v37  ;;  %v1001_v9 = vand.u32 2147483648, %v1945_v37 }
 0x251   :  { %v948_v55 = vmul.f32 %v1578_v33, %v947_v52  ;;  %v1008_v31 = vpack.c.bf16 %v944_v51, %v944_v51  ;;  %vm955_vm4 = vcmp.eq.f32.partialorder %v954_v28, 8.507059e+37  ;;  %vm995_vm6 = vweird.f32 %v1945_v37 }
 0x252   :  { %v979_v56 = vadd.f32 %v1576_v30, %v978_v46  ;;  %1495 = vmatmul.msk.bf16.vlgmr.msra.gmra.mxu1 %vm642_vm1, %v1006_v57  ;;  %v971_v14 = vand.u32 2147483648, %v1948_v43  ;;  %v969_v15 = vand.u32 2147483647, %v1948_v43  ;;  %v1002_v16 = vor.u32 1.1754944e-38, %v1001_v9 }
 0x253   :  { %v949_v58 = vadd.f32 %v1578_v33, %v948_v55  ;;  %v1580_v60 = vpop.eup %1579  ;;  %1497 = vmatmul.msk.bf16.vlgmr.msra.gmra.mxu3 %vm642_vm1, %v1008_v31  ;;  %vm1000_vm9 = vcmp.eq.f32.partialorder %v999_v8, 8.507059e+37  ;;  %vm965_vm10 = vweird.f32 %v1948_v43 }
 0x254   :  { %v983_v62 = vsel %vm982_vm14, %v1576_v30, %v979_v56  ;;  %v991_v1 = vmul.f32 %v1580_v60, %v1945_v37  ;;  %v1582_v2 = vpop.eup %1581  ;;  %vm996_vm5 = vweird.f32 %v1580_v60  ;;  %v972_v20 = vor.u32 1.1754944e-38, %v971_v14 }
 0x255   :  { %v953_v63 = vsel %vm952_vm15, %v1578_v33, %v949_v58  ;;  %v988_v0 = vsel %vm985_vm3, %v987_v59, %v983_v62  ;;  %v961_v7 = vmul.f32 %v1582_v2, %v1948_v43  ;;  %vm966_vm7 = vweird.f32 %v1582_v2  ;;  %vm997_vm8 = vmor %vm995_vm6, %vm996_vm5  ;;  %v1177_v33 = vld [vmem:[%s2028_s10 + $0xc] sm:$0xf] }
 0x256   :  { %v958_v3 = vsel %vm955_vm4, %v957_v61, %v953_v63  ;;  %v989_v4 = vmul.f32 %v1918_v40, %v988_v0  ;;  %v992_v6 = vsub.f32 1.0, %v991_v1  ;;  %vm967_vm11 = vmor %vm965_vm10, %vm966_vm7  ;;  %vm970_vm12 = vcmp.eq.f32.partialorder %v969_v15, 8.507059e+37 }
 0x257   :  { %v959_v5 = vmul.f32 %v1920_v42, %v958_v3  ;;  %v962_v13 = vsub.f32 1.0, %v961_v7  ;;  %v1190_v30 = vsel %vm1024_vm2, %v1174_v29, 0  ;;  %v1247_v34 = vsel %vm1024_vm2, %v1177_v33, 0 }
 0x258   :  { %v1011_v10 = vpack.c.bf16 %v989_v4, %v989_v4  ;;  %v993_v12 = vmul.f32 %v1580_v60, %v992_v6  ;;  %1199 = vmatpush.bf16.msra.mxu0 %v1190_v30  ;;  %1256 = vmatpush.bf16.msra.mxu3 %v1247_v34 }
 0x259   :  { %v1009_v11 = vpack.c.bf16 %v959_v5, %v959_v5  ;;  %v963_v42 = vmul.f32 %v1582_v2, %v962_v13 }
 0x25a   :  { %1500 = vmatmul.msk.bf16.vlgmr.msrb.gmra.mxu2 %vm642_vm1, %v1011_v10  ;;  %v994_v40 = vadd.f32 %v1580_v60, %v993_v12  ;;  %v1550_v10 = vld [vmem:[%s2029_s11] ss:$0 sm:$0xff]  ;;  %s1610_s11 = smov [#allocation2]  }
 0x25b   :  { %1498 = vmatmul.msk.bf16.vlgmr.msrb.gmra.mxu0 %vm642_vm1, %v1009_v11  ;;  %v964_v18 = vadd.f32 %v1582_v2, %v963_v42  ;;  %s1352_s26 = sshll.u32 %s1610_s11, 4  ;;  %s1353_s26 = int_to_ptr.vmem [resolvable:$true] %s1352_s26 }
 0x25c   :  { %v998_v17 = vsel %vm997_vm8, %v1580_v60, %v994_v40  ;;  %1272 = vmatpush.bf16.msrb.mxu0 %v1190_v30 }
 0x25d   :  { %v1003_v19 = vsel %vm1000_vm9, %v1002_v16, %v998_v17  ;;  %v968_v23 = vsel %vm967_vm11, %v1582_v2, %v964_v18 }
 0x25e   :  { %v1004_v21 = vmul.f32 %v1928_v50, %v1003_v19  ;;  %v973_v24 = vsel %vm970_vm12, %v972_v20, %v968_v23  ;;  %v1176_v50 = vld [vmem:[%s2028_s10 + $0x8] sm:$0xf] }
 0x25f   :  { %v974_v26 = vmul.f32 %v1926_v49, %v973_v24  ;;  %v1228_v22 = vsel %vm1024_vm2, %v1176_v50, 0  ;;  %v1175_v49 = vld [vmem:[%s2028_s10 + $0x4] sm:$0xf] }
 0x260   :  { %v1012_v25 = vpack.c.bf16 %v1004_v21, %v1004_v21  ;;  %1237 = vmatpush.bf16.msra.mxu2 %v1228_v22  ;;  %v1209_v32 = vsel %vm1024_vm2, %v1175_v49, 0 }
 0x261   :  { %v1010_v27 = vpack.c.bf16 %v974_v26, %v974_v26  ;;  %1218 = vmatpush.bf16.msra.mxu1 %v1209_v32 }
 0x263   :  { %1501 = vmatmul.msk.bf16.vlgmr.msrb.gmra.mxu3 %vm642_vm1, %v1012_v25  ;;  %1499 = vmatmul.msk.bf16.vlgmr.msrb.gmra.mxu1 %vm642_vm1, %v1010_v27 }
 0x264   :  { %1304 = vmatpush.bf16.msrb.mxu2 %v1228_v22  ;;  %1320 = vmatpush.bf16.msrb.mxu3 %v1247_v34 }
 0x265   :  { %1288 = vmatpush.bf16.msrb.mxu1 %v1209_v32 }
 0x2bb   :  { %v1037_v35 = vpop.f32.mrf.mxu0 }
 0x2bc   :  { %v1178_v36 = vpack.c.bf16 %v1037_v35, %v1037_v35 }
 0x2be   :  { %1502 = vmatmul.msk.bf16.vlgmr.msra.gmra.mxu0 %vm642_vm1, %v1178_v36 }
 0x2c3   :  { %v1039_v37 = vpop.f32.mrf.mxu0 }
 0x2cd   :  { %v1075_v38 = vpop.f32.mrf.mxu2 }
 0x2ce   :  { %v1180_v39 = vpack.c.bf16 %v1075_v38, %v1075_v38 }
 0x2cf   :  { %v1056_v41 = vpop.f32.mrf.mxu1 }
 0x2d0   :  { %1504 = vmatmul.msk.bf16.vlgmr.msra.gmra.mxu2 %vm642_vm1, %v1180_v39  ;;  %v1179_v43 = vpack.c.bf16 %v1056_v41, %v1056_v41 }
 0x2d2   :  { %1503 = vmatmul.msk.bf16.vlgmr.msra.gmra.mxu1 %vm642_vm1, %v1179_v43 }
 0x2d5   :  { %v1077_v48 = vpop.f32.mrf.mxu2 }
 0x2d6   :  { %v1094_v44 = vpop.f32.mrf.mxu3 }
 0x2d7   :  { %v1181_v45 = vpack.c.bf16 %v1094_v44, %v1094_v44  ;;  %v1058_v52 = vpop.f32.mrf.mxu1 }
 0x2d8   :  { %v1113_v51 = vpop.f32.mrf.mxu0 }
 0x2d9   :  { %v1182_v53 = vpack.c.bf16 %v1113_v51, %v1113_v51  ;;  %1505 = vmatmul.msk.bf16.vlgmr.msra.gmra.mxu3 %vm642_vm1, %v1181_v45 }
 0x2db   :  { %1506 = vmatmul.msk.bf16.vlgmr.msrb.gmra.mxu0 %vm642_vm1, %v1182_v53 }
 0x2dd   :  { %v1151_v54 = vpop.f32.mrf.mxu2 }
 0x2de   :  { %v1184_v46 = vpack.c.bf16 %v1151_v54, %v1151_v54  ;;  %v1096_v47 = vpop.f32.mrf.mxu3 }
 0x2e0   :  { %v1115_v55 = vpop.f32.mrf.mxu0  ;;  %1508 = vmatmul.msk.bf16.vlgmr.msrb.gmra.mxu2 %vm642_vm1, %v1184_v46  ;;  %v1132_v28 = vpop.f32.mrf.mxu1 }
 0x2e1   :  { %v1183_v56 = vpack.c.bf16 %v1132_v28, %v1132_v28 }
 0x2e3   :  { %1507 = vmatmul.msk.bf16.vlgmr.msrb.gmra.mxu1 %vm642_vm1, %v1183_v56 }
 0x2e5   :  { %v1153_v57 = vpop.f32.mrf.mxu2 }
 0x2e6   :  { %v1170_v31 = vpop.f32.mrf.mxu3 }
 0x2e7   :  { %v1185_v58 = vpack.c.bf16 %v1170_v31, %v1170_v31 }
 0x2e8   :  { %v1134_v59 = vpop.f32.mrf.mxu1 }
 0x2e9   :  { %1509 = vmatmul.msk.bf16.vlgmr.msrb.gmra.mxu3 %vm642_vm1, %v1185_v58 }
 0x2ee   :  { %v1172_v60 = vpop.f32.mrf.mxu3 }
 0x33b   :  { %v1201_v61 = vpop.f32.mrf.mxu0 }
 0x33c   :  { %v1326_v4 = vsel %vm91_vm0, %v1201_v61, 0.0 }
 0x343   :  { %v1203_v62 = vpop.f32.mrf.mxu0 }
 0x34f   :  { %v1220_v63 = vpop.f32.mrf.mxu1 }
 0x350   :  { %v1327_v1 = vsel %vm91_vm0, %v1220_v63, 0.0 }
 0x351   :  { %v1328_v6 = vadd.f32 %v1327_v1, %v1326_v4 }
 0x353   :  { %v1239_v0 = vpop.f32.mrf.mxu2 }
 0x354   :  { %v1329_v5 = vsel %vm91_vm0, %v1239_v0, 0.0 }
 0x355   :  { %v1330_v8 = vadd.f32 %v1329_v5, %v1328_v6 }
 0x357   :  { %v1222_v3 = vpop.f32.mrf.mxu1 }
 0x358   :  { %v1274_v2 = vpop.f32.mrf.mxu0 }
 0x359   :  { %v1333_v17 = vsel %vm91_vm0, %v1274_v2, 0.0 }
 0x35b   :  { %v1241_v7 = vpop.f32.mrf.mxu2 }
 0x35c   :  { %v1258_v9 = vpop.f32.mrf.mxu3 }
 0x35d   :  { %v1331_v11 = vsel %vm91_vm0, %v1258_v9, 0.0 }
 0x35e   :  { %v1332_v12 = vadd.f32 %v1331_v11, %v1330_v8 }
 0x360   :  { %v1276_v13 = vpop.f32.mrf.mxu0  ;;  %v1344_v14 = vadd.f32 %v1550_v10, %v1332_v12  ;;  %v1290_v40 = vpop.f32.mrf.mxu1 }
 0x361   :  { %v1334_v16 = vsel %vm91_vm0, %v1290_v40, 0.0 }
 0x362   :  { %1346 = vst.msk [vmem:[#allocation2] sm:$0xff] %vm91_vm0, %v1344_v14  ;;  %v1335_v20 = vadd.f32 %v1334_v16, %v1333_v17 }
 0x363   :  { %v1306_v42 = vpop.f32.mrf.mxu2 }
 0x364   :  { %v1260_v15 = vpop.f32.mrf.mxu3  ;;  %v1336_v18 = vsel %vm91_vm0, %v1306_v42, 0.0 }
 0x365   :  { %v1337_v23 = vadd.f32 %v1336_v18, %v1335_v20 }
 0x368   :  { %v1292_v19 = vpop.f32.mrf.mxu1 }
 0x36b   :  { %v1308_v21 = vpop.f32.mrf.mxu2 }
 0x36c   :  { %v1322_v24 = vpop.f32.mrf.mxu3 }
 0x36d   :  { %v1338_v25 = vsel %vm91_vm0, %v1322_v24, 0.0 }
 0x36e   :  { %v1339_v26 = vadd.f32 %v1338_v25, %v1337_v23 }
 0x370   :  { %v1345_v27 = vadd.f32 %v1550_v10, %v1339_v26 }
 0x372   :  { %1347 = vst.msk [vmem:[#allocation2 + $0x8] sm:$0xff] %vm91_vm0, %v1345_v27 }
 0x373   :  { %1360 = dma.vmem_to_hbm [thread:$0]  %s1353_s26, 256, %s1355_s28, [#allocation3], %s1611_s29, %s1611_s29, %s1612_s30  }
 0x374   :  { %v1324_v29 = vpop.f32.mrf.mxu3 }
 0x375   :  { %1607 = dma.done.wait [#allocation3], 256  }
 0x376   :  { %1608 = vsyncadd [#allocation3], 4294967040 }
 0x377   :  { %1365 = vsyncpa [#allocation3], 1 }

</bundles_post_ra>
